<compile_context>
chip_gen: v7x
topology: tpu7x:2x2x1
jax: 0.10.0
libtpu: 0.0.40
codegen_flags: <defaults>
</compile_context>

<pallas_src>
import functools
import math

import jax
import jax.numpy as jnp
from jax import lax
from jax.experimental import pallas as pl
from jax.experimental.pallas import tpu as pltpu


def _cdiv(a, b):
    return -(-a // b)


def _se_kernel(x_ref, w1t_ref, w2t_ref, o_ref, *, inv_hw):
    # x_ref: (Bb, C, HW) slab of the batch.  Last dim is the full, unpadded
    # flattened spatial extent; Mosaic masks the lane tail for loads/stores
    # and for the lane-axis reduction below.
    x = x_ref[...]                                              # input dtype

    # --- squeeze: global average pool over spatial (lane reduction) ---
    # f32 accumulation without materializing an f32 copy of the whole slab.
    pooled = jnp.sum(x, axis=-1, dtype=jnp.float32) * inv_hw    # (Bb, C) f32

    # --- excitation: fc1 -> exact (erf) GELU -> fc2 -> sigmoid ---
    h = jnp.dot(pooled.astype(w1t_ref.dtype), w1t_ref[...],
                preferred_element_type=jnp.float32)             # (Bb, Hid)
    h = 0.5 * h * (1.0 + lax.erf(h * (1.0 / math.sqrt(2.0))))
    y = jnp.dot(h.astype(w2t_ref.dtype), w2t_ref[...],
                preferred_element_type=jnp.float32)             # (Bb, C)
    y = jax.nn.sigmoid(y)

    # --- scale: broadcast per-channel gate over spatial, no transposes ---
    o_ref[...] = (x * y.astype(x.dtype)[:, :, None]).astype(o_ref.dtype)


def _tpu_budget():
    """(vmem_capacity_bytes, multi_tensorcore?) with conservative fallbacks."""
    kind = ""
    try:
        kind = jax.devices()[0].device_kind.lower()
    except Exception:
        pass
    multi_tc = ("v7" in kind) or ("7x" in kind)
    vmem = None
    try:
        vmem = int(pltpu.get_tpu_info().vmem_capacity_bytes)
    except Exception:
        vmem = None
    if vmem is None:
        # Conservative defaults: v7x has 64 MiB / TC, v5e/v6e have 128 MiB.
        vmem = (64 << 20) if multi_tc else (128 << 20)
    return vmem, multi_tc


def _choose_batch_block(b, per_batch_bytes, w_bytes, vmem, multi_tc):
    """Pick the batch block bb and a safe vmem_limit for pallas_call."""
    headroom = 2 << 20
    # Usable scoped-VMEM cap: ~52 MiB on v7x (64 MiB physical), up to 96 MiB
    # on the 128 MiB parts (v5e/v6e).
    cap = min(vmem - (12 << 20), 96 << 20)

    if multi_tc:
        target = 10 << 20                       # v7x: ~8-12 MiB slabs
    else:
        target = (14 << 20) if vmem >= (96 << 20) else (6 << 20)

    bb = max(1, min(b, target // max(per_batch_bytes, 1)))

    if multi_tc and b >= 2:
        # Keep the grid even (>= 2) so the "parallel" batch axis shards
        # across both v7x TensorCores; single-TC chips skip this (it would
        # only shrink the slab for no parallelism benefit).
        g = _cdiv(b, bb)
        if g < 2 or (g % 2):
            g = max(2, g + (g % 2))
            bb = max(1, _cdiv(b, g))

    # Feasibility: double-buffered in+out slabs + resident weights must fit.
    while bb > 1 and 4 * bb * per_batch_bytes + 2 * w_bytes + headroom > cap:
        bb -= 1
    # If even bb == 1 exceeds the budget (huge C*HW per image) a spatially
    # split two-pass variant would be required; we clamp and proceed here.
    vmem_limit = int(min(max(4 * bb * per_batch_bytes + 2 * w_bytes + headroom,
                             16 << 20),
                         cap))
    return bb, vmem_limit


def se_forward(x, w1, w2):
    """SE forward.

    x : (B, C, H, W) NCHW (PyTorch convention)
    w1: (Hid, C)  torch Linear(oup, hidden).weight layout
    w2: (C, Hid)  torch Linear(hidden, oup).weight layout
    """
    b, c, h, w = x.shape
    hw = h * w
    hid = w1.shape[0]
    itemsize = jnp.dtype(x.dtype).itemsize

    # Flattened spatial as the lane axis -- no padding, no post-call slice
    # (reshape of a contiguous array is metadata-only).
    x3 = x.reshape(b, c, hw)

    # Weights pre-transposed once on the host: (C,Hid) and (Hid,C); kept in
    # x's dtype when x is bf16 (MXU-native single pass), else f32.
    wdt = x.dtype if x.dtype == jnp.bfloat16 else jnp.float32
    w1t = jnp.asarray(w1, wdt).T                                 # (C, Hid)
    w2t = jnp.asarray(w2, wdt).T                                 # (Hid, C)
    w_bytes = (w1t.size + w2t.size) * jnp.dtype(wdt).itemsize

    per_batch_bytes = c * hw * itemsize
    vmem, multi_tc = _tpu_budget()
    bb, vmem_limit = _choose_batch_block(b, per_batch_bytes, w_bytes,
                                         vmem, multi_tc)
    grid = (_cdiv(b, bb),)                      # ragged last block allowed

    cost = pl.CostEstimate(
        flops=2 * b * c * hid * 2 + 2 * b * c * hw,     # fc1+fc2, pool+gate
        transcendentals=b * (hid + c),                  # erf + sigmoid
        bytes_accessed=2 * b * c * hw * itemsize + 2 * w_bytes,
    )

    kernel = functools.partial(_se_kernel, inv_hw=1.0 / float(hw))

    # NOTE: on v7x, with the larger slabs, pipeline_mode=pl.Buffered(3) on the
    # x input spec is a cheap follow-up sweep to hide DMA-issue latency.
    out = pl.pallas_call(
        kernel,
        out_shape=jax.ShapeDtypeStruct((b, c, hw), x.dtype),
        grid_spec=pltpu.PrefetchScalarGridSpec(
            num_scalar_prefetch=0,
            grid=grid,
            in_specs=[
                pl.BlockSpec((bb, c, hw), lambda i: (i, 0, 0)),
                pl.BlockSpec((c, hid), lambda i: (0, 0)),
                pl.BlockSpec((hid, c), lambda i: (0, 0)),
            ],
            out_specs=pl.BlockSpec((bb, c, hw), lambda i: (i, 0, 0)),
        ),
        compiler_params=pltpu.CompilerParams(
            dimension_semantics=("parallel",),
            vmem_limit_bytes=vmem_limit,
        ),
        cost_estimate=cost,
    )(x3, w1t, w2t)

    return out.reshape(b, c, h, w)


def se_reference(x, w1, w2):
    """Pure-JAX reference mirroring the PyTorch module."""
    y = jnp.mean(x, axis=(2, 3))                            # (B, C)
    y = y @ w1.T                                            # (B, Hid)
    y = 0.5 * y * (1.0 + lax.erf(y / jnp.sqrt(2.0)))        # exact GELU
    y = jax.nn.sigmoid(y @ w2.T)                            # (B, C)
    return x * y[:, :, None, None]


if __name__ == "__main__":
    # Module config: SE(inp=16, oup=16, expansion=0.25) -> hidden = 4.
    # 14x14 spatial (hw=196, NOT a multiple of 128) deliberately exercises the
    # unpadded masked-lane reduction / store path on real hardware.
    B, C, H, W = 2, 16, 14, 14
    INP, OUP, EXP = 16, 16, 0.25
    HID = int(INP * EXP)

    key = jax.random.PRNGKey(0)
    kx, k1, k2 = jax.random.split(key, 3)

    x = jax.random.normal(kx, (B, C, H, W), dtype=jnp.float32)
    # Deterministic synthetic weights (torch nn.Linear weight shapes, no bias)
    w1 = jax.random.normal(k1, (HID, OUP), dtype=jnp.float32) * 0.1   # fc1.weight
    w2 = jax.random.normal(k2, (OUP, HID), dtype=jnp.float32) * 0.1   # fc2.weight

    out = jax.block_until_ready(se_forward(x, w1, w2))

    ref = se_reference(x, w1, w2)
    assert out.shape == (B, C, H, W)
    assert jnp.allclose(out, ref, atol=1e-5, rtol=1e-5), "mismatch vs reference"

    print("KERNEL_OK")
</pallas_src>

<mosaic_0001>
module attributes {stable_mosaic.version = 11 : i64} {
  func.func @_se_kernel(%arg0: i32, %arg1: memref<2x16x196xf32, #tpu.memory_space<vmem>>, %arg2: memref<16x4xf32, #tpu.memory_space<vmem>>, %arg3: memref<4x16xf32, #tpu.memory_space<vmem>>, %arg4: memref<2x16x196xf32, #tpu.memory_space<vmem>>) attributes {dimension_semantics = [#tpu.dimension_semantics<parallel>], iteration_bounds = array<i64: 1>, scalar_prefetch = 0 : i64, scratch_operands = 0 : i64, tpu.core_type = #tpu.core_type<tc>, window_params = [{transform_indices = @transform_0, window_bounds = array<i64: 2, 16, 196>}, {pipeline_mode = #tpu.pipeline_mode<synchronous>, transform_indices = @transform_1, window_bounds = array<i64: 16, 4>}, {pipeline_mode = #tpu.pipeline_mode<synchronous>, transform_indices = @transform_2, window_bounds = array<i64: 4, 16>}, {transform_indices = @transform_3, window_bounds = array<i64: 2, 16, 196>}]} {
    %c0 = arith.constant 0 : index
    %c0_0 = arith.constant 0 : index
    %c0_1 = arith.constant 0 : index
    %0 = vector.load %arg1[%c0, %c0_0, %c0_1] : memref<2x16x196xf32, #tpu.memory_space<vmem>>, vector<2x16x196xf32>
    %cst = arith.constant dense<0.000000e+00> : vector<2x16xf32>
    %1 = vector.multi_reduction <add>, %0, %cst [2] : vector<2x16x196xf32> to vector<2x16xf32>
    %cst_2 = arith.constant 0.00510204071 : f32
    %2 = vector.broadcast %cst_2 : f32 to vector<2x16xf32>
    %3 = arith.mulf %1, %2 : vector<2x16xf32>
    %c0_3 = arith.constant 0 : index
    %c0_4 = arith.constant 0 : index
    %4 = vector.load %arg2[%c0_3, %c0_4] : memref<16x4xf32, #tpu.memory_space<vmem>>, vector<16x4xf32>
    %cst_5 = arith.constant dense<0.000000e+00> : vector<2x4xf32>
    %5 = tpu.matmul %3, %4, %cst_5 {dimension_numbers = #tpu.dot_dimension_numbers<[1], [0], [0], [1], [0, 0, 1, 1], [], []>} : vector<2x16xf32>, vector<16x4xf32>, vector<2x4xf32> -> vector<2x4xf32>
    %cst_6 = arith.constant 5.000000e-01 : f32
    %6 = vector.broadcast %cst_6 : f32 to vector<2x4xf32>
    %7 = arith.mulf %6, %5 : vector<2x4xf32>
    %cst_7 = arith.constant 0.707106769 : f32
    %8 = vector.broadcast %cst_7 : f32 to vector<2x4xf32>
    %9 = arith.mulf %5, %8 : vector<2x4xf32>
    %10 = math.erf %9 : vector<2x4xf32>
    %cst_8 = arith.constant 1.000000e+00 : f32
    %11 = vector.broadcast %cst_8 : f32 to vector<2x4xf32>
    %12 = arith.addf %11, %10 : vector<2x4xf32>
    %13 = arith.mulf %7, %12 : vector<2x4xf32>
    %c0_9 = arith.constant 0 : index
    %c0_10 = arith.constant 0 : index
    %14 = vector.load %arg3[%c0_9, %c0_10] : memref<4x16xf32, #tpu.memory_space<vmem>>, vector<4x16xf32>
    %cst_11 = arith.constant dense<0.000000e+00> : vector<2x16xf32>
    %15 = tpu.matmul %13, %14, %cst_11 {dimension_numbers = #tpu.dot_dimension_numbers<[1], [0], [0], [1], [0, 0, 1, 1], [], []>} : vector<2x4xf32>, vector<4x16xf32>, vector<2x16xf32> -> vector<2x16xf32>
    %16 = arith.negf %15 : vector<2x16xf32>
    %17 = math.exp %16 : vector<2x16xf32>
    %cst_12 = arith.constant 1.000000e+00 : f32
    %18 = vector.broadcast %cst_12 : f32 to vector<2x16xf32>
    %19 = arith.addf %18, %17 : vector<2x16xf32>
    %20 = arith.divf %18, %19 : vector<2x16xf32>
    %21 = vector.shape_cast %20 : vector<2x16xf32> to vector<2x16x1xf32>
    %22 = vector.broadcast %21 : vector<2x16x1xf32> to vector<2x16x196xf32>
    %23 = arith.mulf %0, %22 : vector<2x16x196xf32>
    %c0_13 = arith.constant 0 : index
    %c0_14 = arith.constant 0 : index
    %c0_15 = arith.constant 0 : index
    %24 = vector.load %arg4[%c0_13, %c0_14, %c0_15] : memref<2x16x196xf32, #tpu.memory_space<vmem>>, vector<2x16x196xf32>
    tpu.vector_store %arg4[%c0_13, %c0_14, %c0_15], %23 {strides = array<i32>} : memref<2x16x196xf32, #tpu.memory_space<vmem>>, vector<2x16x196xf32>,
    return
  }
  func.func @transform_0(%arg0: i32) -> (i32, i32, i32) {
    %c0_i32 = arith.constant 0 : i32
    %c0_i32_0 = arith.constant 0 : i32
    %c0_i32_1 = arith.constant 0 : i32
    return %arg0, %c0_i32, %c0_i32_0 : i32, i32, i32
  }
  func.func @transform_1(%arg0: i32) -> (i32, i32) {
    %c0_i32 = arith.constant 0 : i32
    %c0_i32_0 = arith.constant 0 : i32
    %c0_i32_1 = arith.constant 0 : i32
    return %c0_i32, %c0_i32_0 : i32, i32
  }
  func.func @transform_2(%arg0: i32) -> (i32, i32) {
    %c0_i32 = arith.constant 0 : i32
    %c0_i32_0 = arith.constant 0 : i32
    %c0_i32_1 = arith.constant 0 : i32
    return %c0_i32, %c0_i32_0 : i32, i32
  }
  func.func @transform_3(%arg0: i32) -> (i32, i32, i32) {
    %c0_i32 = arith.constant 0 : i32
    %c0_i32_0 = arith.constant 0 : i32
    %c0_i32_1 = arith.constant 0 : i32
    return %arg0, %c0_i32, %c0_i32_0 : i32, i32, i32
  }
}

</mosaic_0001>

<bundles_post_ra>
// kernel: tpu_custom_call.1
= control target key start
LH: loop header
LB: loop body
LE: loop exit
PB: predicated region body
PF: predicated region fallthrough
CT: control target
= control target key end

     0   :  { %8 = vsyncpa [#allocation3], 0  ;;  %s497_s0 = inlined_call_operand.hbm [shape: f32[2,16,196], index: 0, kind: input, shape index: {}]   ;;  %s498_s1 = inlined_call_operand.vmem [shape: f32[16,4], index: 1, kind: input, shape index: {}]   ;;  %s499_s2 = inlined_call_operand.vmem [shape: f32[4,16], index: 2, kind: input, shape index: {}]   ;;  %s500_s3 = inlined_call_operand.hbm [shape: f32[2,16,196], index: 3, kind: output, shape index: {}]  }
   0x1   :  { %9 = vsyncpa [#allocation4], 0  ;;  %s391_s12 = smov [#allocation2]   ;;  %s343_s16 = scalar_lea.hbm %s497_s0, 1024 }
   0x2   :  { %s15_s13 = sshll.u32 %s391_s12, 4  ;;  %p344_p0 = scmp.ne.s32.totalorder %s497_s0, %s343_s16  ;;  %s16_s13 = int_to_ptr.vmem [resolvable:$true] %s15_s13 }
   0x3   :  { %p347_p1 = scmp.lt.u32.totalorder %s343_s16, %s497_s0 }
   0x5   :  { %p349_p2 = pnand %p347_p1, %p344_p0 }
   0x7   :  { %352 = shalt.err (!%p349_p2)
}
   0x8   :  { %s353_s21 = scalar_lea.vmem %s16_s13, 1024  ;;  %p358_p4 = scmp.lt.s32.totalorder %s16_s13, %s16_s13 }
   0x9   :  { %p354_p3 = scmp.ne.s32.totalorder %s16_s13, %s353_s21  ;;  %p359_p5 = scmp.lt.s32.totalorder %s353_s21, %s353_s21 }
   0xb   :  { %p360_p6 = por %p359_p5, %p358_p4 }
   0xd   :  { %p361_p7 = pnand %p360_p6, %p354_p3 }
   0xf   :  { %364 = shalt.err (!%p361_p7)
}
  0x10   :  { %s392_s22 = smov 256   ;;  %s393_s23 = smov 16  }
  0x11   :  { %21 = dma.hbm_to_vmem [thread:$0]  %s497_s0, 1024, %s16_s13, [#allocation3], %s392_s22, %s392_s22, %s393_s23  }
  0x12   :  { %387 = dma.done.wait [#allocation3], 1024  }
  0x13   :  { %388 = vsyncadd [#allocation3], 4294966272  ;;  %vm37_vm0 = vcmask 556032   ;;  %v433_v0 = vld [vmem:[#allocation2 + $0x20] sm:$0xff]  ;;  %v435_v1 = vld [vmem:[#allocation2 + $0x28] sm:$0xff]  ;;  %v394_v19 = vmov 0.0|0.0   ;;  %v64_v21 = vlaneseq }
  0x14   :  { %v437_v2 = vld [vmem:[#allocation2] sm:$0xff]  ;;  %v46_v3 = vsel %vm37_vm0, %v435_v1, 0.0  ;;  %v441_v4 = vld [vmem:[#allocation2 + $0x8] sm:$0xff]  ;;  %v443_v5 = vld [vmem:[#allocation2 + $0x30] sm:$0xff]  ;;  %327 = vmatprep.subr.bf16.mxu0 %v394_v19  ;;  %vm395_vm1 = vmmov 0   ;;  %v396_v20 = vmov 0.0  }
  0x15   :  { %v445_v6 = vld [vmem:[#allocation2 + $0x38] sm:$0xff]  ;;  %v47_v7 = vadd.f32 %v46_v3, %v433_v0  ;;  %v38_v8 = vsel %vm37_vm0, %v441_v4, 0.0  ;;  %v452_v10 = vld [vmem:[#allocation2 + $0x10] sm:$0xff]  ;;  %v58_v16 = vld [vmem:[%s498_s1] sm:$0xff]  ;;  %319 = vmatprep.mubr.msk.f32.mxu0 %vm395_vm1, %v396_v20  ;;  %322 = vmatprep.subr.mxu1 %v396_v20  ;;  %v65_v22 = vand.u32 127, %v64_v21  ;;  %v67_v23 = vshrl.u32 %v64_v21, 7 }
  0x16   :  { %v50_v9 = vsel %vm37_vm0, %v445_v6, 0.0  ;;  %v454_v11 = vld [vmem:[#allocation2 + $0x18] sm:$0xff]  ;;  %v39_v12 = vadd.f32 %v38_v8, %v437_v2  ;;  %v59_v17 = vld [vmem:[%s498_s1 + $0x8] sm:$0xff]  ;;  %324 = vmatprep.mubr.msk.f32.mxu1 %vm395_vm1, %v396_v20  ;;  %vm75_vm2 = vcmask 130112   ;;  %vm86_vm3 = vcmask 1041409  }
  0x17   :  { %v42_v13 = vsel %vm37_vm0, %v454_v11, 0.0  ;;  %48 = vadd.xlane.f32.xlu1 %v47_v7  ;;  %v51_v14 = vadd.f32 %v50_v9, %v443_v5  ;;  %v328_v18 = vpack.c.bf16 %v59_v17, %v58_v16  ;;  %v70_v24 = vadd.s32 4294967288, %v65_v22  ;;  %v166_v42 = vld [vmem:[%s499_s2] sm:$0xf]  ;;  %s397_s2 = smov [#allocation5]  }
  0x18   :  { %40 = vadd.xlane.f32.xlu0 %v39_v12  ;;  %v43_v15 = vadd.f32 %v42_v13, %v452_v10  ;;  %v68_v27 = vsub.s32 %v65_v22, %v67_v23  ;;  %vm88_vm4 = vcmask 130048   ;;  %vm171_vm5 = vcmask 1043456   ;;  %s294_s30 = sshll.u32 %s397_s2, 4  ;;  %s295_s30 = int_to_ptr.vmem [resolvable:$true] %s294_s30 }
  0x19   :  { %329 = vmatpush3.bf16.msra.mxu0 %v328_v18  ;;  %v73_v29 = vsub.s32 %v70_v24, %v67_v23  ;;  %323 = vmatpush3.msk.msra.mxu1 %vm171_vm5, %v166_v42  ;;  %vm167_vm6 = vcmask 31744   ;;  %v253_v55 = vsub.s32 0, %v67_v23  ;;  %v264_v58 = vsub.s32 1, %v67_v23  ;;  %s365_s4 = scalar_lea.vmem %s295_s30, 1024  ;;  %p370_p9 = scmp.lt.s32.totalorder %s295_s30, %s295_s30 }
  0x1a   :  { %p366_p8 = scmp.ne.s32.totalorder %s295_s30, %s365_s4  ;;  %p371_p10 = scmp.lt.s32.totalorder %s365_s4, %s365_s4 }
  0x1b   :  { %52 = vadd.xlane.f32.xlu1 %v51_v14 }
  0x1c   :  { %44 = vadd.xlane.f32.xlu0 %v43_v15  ;;  %p372_p11 = por %p371_p10, %p370_p9 }
  0x1e   :  { %p373_p12 = pnand %p372_p11, %p366_p8 }
  0xa4   :  { %v49_v25 = vpop.xlane.xlu1 %48 }
  0xa5   :  { %v41_v26 = vpop.xlane.xlu0 %40  ;;  %v56_v28 = vmul.f32 0.0051020407, %v49_v25 }
  0xa6   :  { %v54_v30 = vmul.f32 0.0051020407, %v41_v26 }
  0xa7   :  { %v80_v35 = vrot.slane %v56_v28, %v68_v27 }
  0xa8   :  { %v53_v31 = vpop.xlane.xlu1 %52  ;;  %v69_v37 = vrot.slane %v54_v30, %v68_v27 }
  0xa9   :  { %v57_v32 = vmul.f32 0.0051020407, %v53_v31  ;;  %v45_v33 = vpop.xlane.xlu0 %44 }
  0xaa   :  { %v55_v34 = vmul.f32 0.0051020407, %v45_v33 }
  0xab   :  { %v84_v36 = vrot.slane %v57_v32, %v73_v29 }
  0xac   :  { %v74_v38 = vrot.slane %v55_v34, %v73_v29 }
  0xad   :  { %v85_v39 = vsel %vm75_vm2, %v84_v36, %v80_v35 }
  0xae   :  { %v76_v40 = vsel %vm75_vm2, %v74_v38, %v69_v37 }
  0xaf   :  { %v87_v41 = vsel %vm86_vm3, %v85_v39, %v76_v40 }
  0xb0   :  { %320 = vmatmul.mubr.msk.f32.vlgmr.msra.gmra.mrb[0].mxu0 %vm88_vm4, %v87_v41 }
 0x183   :  { %v157_v43 = vpop.f32.mrb[0].mxu0 }
 0x184   :  { %v162_v44 = vmul.f32 0.70710677, %v157_v43  ;;  %v321_v45 = vpop.f32.mrb[1].mxu0  ;;  %v161_v47 = vmul.f32 0.5, %v157_v43 }
 0x186   :  { %337 = verf.f32 %v162_v44 }
 0x190   :  { %v338_v46 = vpop.eup %337 }
 0x191   :  { %v164_v48 = vadd.f32 1.0, %v338_v46 }
 0x193   :  { %v165_v49 = vmul.f32 %v164_v48, %v161_v47 }
 0x195   :  { %325 = vmatmul.mubr.msk.f32.vlgmr.msra.gmra.mrb[0].mxu1 %vm167_vm6, %v165_v49 }
 0x268   :  { %v241_v50 = vpop.f32.mrb[0].mxu1 }
 0x269   :  { %v309_v51 = vmul.f32 -1.442695, %v241_v50  ;;  %v326_v52 = vpop.f32.mrb[1].mxu1 }
 0x26b   :  { %339 = vpow2.f32 %v309_v51 }
 0x275   :  { %v340_v53 = vpop.eup %339 }
 0x276   :  { %v248_v54 = vadd.f32 1.0, %v340_v53 }
 0x278   :  { %341 = vrcp.f32 %v248_v54 }
 0x282   :  { %v342_v56 = vpop.eup %341 }
 0x283   :  { %v254_v57 = vrot.slane %v342_v56, %v253_v55  ;;  %v265_v59 = vrot.slane %v342_v56, %v264_v58 }
 0x285   :  { %260 = vbcast.lane.b32.xlu1 %v254_v57, 264  ;;  %256 = vbcast.lane.b32.xlu0 %v254_v57, 256 }
 0x289   :  { %267 = vbcast.lane.b32.xlu1 %v265_v59, 256 }
 0x28d   :  { %271 = vbcast.lane.b32.xlu1 %v265_v59, 264 }
 0x2f7   :  { %v261_v60 = vpop.permute.xlu1 %260  ;;  %v257_v61 = vpop.permute.xlu0 %256 }
 0x2f8   :  { %v275_v62 = vmul.f32 %v261_v60, %v452_v10  ;;  %v276_v63 = vmul.f32 %v261_v60, %v454_v11  ;;  %v273_v3 = vmul.f32 %v257_v61, %v437_v2  ;;  %v274_v7 = vmul.f32 %v257_v61, %v441_v4 }
 0x2fa   :  { %283 = vst [vmem:[#allocation5 + $0x10] sm:$0xff] %v275_v62  ;;  %284 = vst.msk [vmem:[#allocation5 + $0x18] sm:$0xff] %vm37_vm0, %v276_v63 }
 0x2fb   :  { %281 = vst [vmem:[#allocation5] sm:$0xff] %v273_v3  ;;  %282 = vst.msk [vmem:[#allocation5 + $0x8] sm:$0xff] %vm37_vm0, %v274_v7  ;;  %v268_v8 = vpop.permute.xlu1 %267 }
 0x2fc   :  { %v277_v9 = vmul.f32 %v268_v8, %v433_v0  ;;  %v278_v12 = vmul.f32 %v268_v8, %v435_v1 }
 0x2fe   :  { %285 = vst [vmem:[#allocation5 + $0x20] sm:$0xff] %v277_v9  ;;  %286 = vst.msk [vmem:[#allocation5 + $0x28] sm:$0xff] %vm37_vm0, %v278_v12 }
 0x2ff   :  { %v272_v10 = vpop.permute.xlu1 %271 }
 0x300   :  { %v279_v2 = vmul.f32 %v272_v10, %v443_v5  ;;  %v280_v4 = vmul.f32 %v272_v10, %v445_v6 }
 0x302   :  { %287 = vst [vmem:[#allocation5 + $0x30] sm:$0xff] %v279_v2  ;;  %288 = vst.msk [vmem:[#allocation5 + $0x38] sm:$0xff] %vm37_vm0, %v280_v4 }
 0x303   :  { %376 = shalt.err (!%p373_p12)
}
 0x304   :  { %s377_s7 = scalar_lea.hbm %s500_s3, 1024 }
 0x305   :  { %p378_p13 = scmp.ne.s32.totalorder %s500_s3, %s377_s7  ;;  %p381_p0 = scmp.lt.u32.totalorder %s377_s7, %s500_s3 }
 0x307   :  { %p383_p1 = pnand %p381_p0, %p378_p13 }
 0x309   :  { %386 = shalt.err (!%p383_p1)
}
 0x30a   :  { %300 = dma.vmem_to_hbm [thread:$0]  %s295_s30, 1024, %s500_s3, [#allocation4], %s392_s22, %s392_s22, %s393_s23  }
 0x30b   :  { %389 = dma.done.wait [#allocation4], 1024  }
 0x30c   :  { %390 = vsyncadd [#allocation4], 4294966272 }
 0x30d   :  { %304 = vsyncpa [#allocation3], 1 }
 0x30e   :  { %305 = vsyncpa [#allocation4], 1 }

</bundles_post_ra>
